<compile_context>
chip_gen: v7x
topology: tpu7x:2x2x1
jax: 0.10.0
libtpu: 0.0.40
codegen_flags: <defaults>
</compile_context>

<pallas_src>
import math
from functools import partial

import jax
import jax.numpy as jnp
from jax import lax
from jax.experimental import pallas as pl
from jax.experimental.pallas import tpu as pltpu

# ----------------------------------------------------------------------------
# Tiling / VMEM configuration
# ----------------------------------------------------------------------------
_DEF_TM, _DEF_TN, _DEF_TK = 512, 512, 512     # matmul tiles (MXU-friendly)
_DEF_TQ, _DEF_TKV = 512, 256                  # flash-attention tiles
_NEG_INF = -1e30                              # finite mask value (no NaN rows)

_SQRT_HALF = 0.7071067811865476
_SQRT_2_OVER_PI = 0.7978845608028654


def _vmem_limit_bytes():
    # Per-generation scoped-VMEM budget: leave ~16 MiB headroom under physical
    # VMEM (v5e/v6e: 128 MiB -> 110 MiB cap, v7x: 64 MiB -> 48 MiB).
    try:
        cap = getattr(pltpu.get_tpu_info(), "vmem_capacity_bytes", None)
        if cap:
            return int(min(cap - 16 * 1024 * 1024, 110 * 1024 * 1024))
    except Exception:
        pass
    return 48 * 1024 * 1024


_VMEM_LIMIT = _vmem_limit_bytes()


def _round_up(n, m):
    return ((n + m - 1) // m) * m


def _pick_tile(dim, preferred):
    """Largest of (preferred, 512, 256, 128) that exactly tiles `dim`, else full dim."""
    for t in (preferred, 512, 256, 128):
        if t <= dim and dim % t == 0:
            return t
    return dim


def _choose_row_tiling(M, preferred):
    """(padded_M, row_tile).  Exact divisor when possible, otherwise pad to a
    128-multiple (large M) / 8-multiple (small M) so that non-divisible
    sequence lengths never collapse into one huge VMEM block."""
    for t in (preferred, 512, 256, 128):
        if t <= M and M % t == 0:
            return M, t
    if M >= 128:
        Mp = _round_up(M, 128)
        for t in (preferred, 512, 256, 128):
            if Mp % t == 0:
                return Mp, t
        return Mp, 128
    Mp = _round_up(max(M, 1), 8)
    return Mp, Mp


def _pad_rows(x, Mp):
    M = x.shape[0]
    if Mp == M:
        return x
    return jnp.pad(x, ((0, Mp - M), (0, 0)))


def _seq_pad(S):
    # Long sequences padded to 512 multiples (big flash q tiles); short to 8.
    return _round_up(S, 512) if S >= 512 else _round_up(S, 8)


# ----------------------------------------------------------------------------
# In-kernel activation helpers (fp32)
# ----------------------------------------------------------------------------
def _erf_approx(x):
    # Abramowitz & Stegun 7.1.26 (|err| < 1.5e-7): keeps nn.GELU()'s exact-erf
    # semantics without relying on an erf lowering inside Mosaic.
    a1, a2, a3, a4, a5 = 0.254829592, -0.284496736, 1.421413741, -1.453152027, 1.061405429
    pp = 0.3275911
    sign = jnp.where(x >= 0.0, 1.0, -1.0)
    ax = jnp.abs(x)
    t = 1.0 / (1.0 + pp * ax)
    poly = ((((a5 * t + a4) * t + a3) * t + a2) * t + a1) * t
    return sign * (1.0 - poly * jnp.exp(-ax * ax))


def _gelu_erf(x):  # nn.GELU() (exact erf)
    return 0.5 * x * (1.0 + _erf_approx(x * _SQRT_HALF))


def _gelu_tanh(x):  # gelu_pytorch_tanh
    return 0.5 * x * (1.0 + jnp.tanh(_SQRT_2_OVER_PI * (x + 0.044715 * x * x * x)))


# ----------------------------------------------------------------------------
# Fused tiled matmul: [norm prologue] -> X @ W (fp32 acc) -> [+bias] ->
#                     [GELU] -> [+residual]
# ----------------------------------------------------------------------------
def _make_mm_kernel(nsteps, norm, has_bias, has_resid, activation, eps, rhs_t):
    def kernel(*refs):
        it = iter(refs)
        x_ref = next(it)
        w_ref = next(it)
        nw_ref = ng_ref = nb_ref = b_ref = r_ref = None
        if norm == "rms":
            nw_ref = next(it)
        elif norm == "layer":
            ng_ref = next(it)
            nb_ref = next(it)
        if has_bias:
            b_ref = next(it)
        if has_resid:
            r_ref = next(it)
        o_ref = next(it)
        acc_ref = next(it)

        k = pl.program_id(2)

        @pl.when(k == 0)
        def _init():
            acc_ref[...] = jnp.zeros_like(acc_ref)

        x = x_ref[...]
        if norm == "rms":  # GemmaRMSNorm: x * rsqrt(mean(x^2)+eps) * (1+w)
            xf = x.astype(jnp.float32)
            var = jnp.mean(xf * xf, axis=-1, keepdims=True)
            xf = xf * lax.rsqrt(var + eps)
            xf = xf * (1.0 + nw_ref[...].astype(jnp.float32))
            x = xf.astype(x_ref.dtype)
        elif norm == "layer":  # nn.LayerNorm
            xf = x.astype(jnp.float32)
            mu = jnp.mean(xf, axis=-1, keepdims=True)
            var = jnp.mean(jnp.square(xf - mu), axis=-1, keepdims=True)
            xf = (xf - mu) * lax.rsqrt(var + eps)
            xf = xf * ng_ref[...].astype(jnp.float32) + nb_ref[...].astype(jnp.float32)
            x = xf.astype(x_ref.dtype)

        if rhs_t:  # contract x dim-1 with w dim-1 (no transposed copy of W)
            part = lax.dot_general(x, w_ref[...], (((1,), (1,)), ((), ())),
                                   preferred_element_type=jnp.float32)
        else:
            part = jnp.dot(x, w_ref[...], preferred_element_type=jnp.float32)
        acc_ref[...] += part

        @pl.when(k == nsteps - 1)
        def _finish():
            out = acc_ref[...]
            if has_bias:
                out = out + b_ref[...].astype(jnp.float32)
            if activation == "gelu_erf":
                out = _gelu_erf(out)
            elif activation == "gelu_tanh":
                out = _gelu_tanh(out)
            if has_resid:
                out = out + r_ref[...].astype(jnp.float32)
            o_ref[...] = out.astype(o_ref.dtype)

    return kernel


def fused_matmul(x, w, bias=None, *, norm=None, norm_w=None, norm_g=None,
                 norm_b=None, activation=None, residual=None, eps=1e-6,
                 rhs_transposed=False, out_dtype=None,
                 tm=_DEF_TM, tn=_DEF_TN, tk=_DEF_TK):
    M, K = x.shape
    N = w.shape[0] if rhs_transposed else w.shape[1]
    out_dtype = out_dtype or x.dtype
    Mp, tm_ = _choose_row_tiling(M, tm)
    tn_ = _pick_tile(N, tn)
    # A fused norm needs the whole row -> do not tile K in that case.
    tk_ = K if norm is not None else _pick_tile(K, tk)
    gm, gn, gk = Mp // tm_, N // tn_, K // tk_

    xp = _pad_rows(x, Mp)
    inputs = [xp, w]
    in_specs = [pl.BlockSpec((tm_, tk_), lambda i, j, k: (i, k))]
    if rhs_transposed:
        in_specs.append(pl.BlockSpec((tn_, tk_), lambda i, j, k: (j, k)))
    else:
        in_specs.append(pl.BlockSpec((tk_, tn_), lambda i, j, k: (k, j)))
    if norm == "rms":
        inputs.append(norm_w.reshape(1, K).astype(jnp.float32))
        in_specs.append(pl.BlockSpec((1, tk_), lambda i, j, k: (0, k)))
    elif norm == "layer":
        inputs.extend([norm_g.reshape(1, K).astype(jnp.float32),
                       norm_b.reshape(1, K).astype(jnp.float32)])
        in_specs.extend([pl.BlockSpec((1, tk_), lambda i, j, k: (0, k)),
                         pl.BlockSpec((1, tk_), lambda i, j, k: (0, k))])
    if bias is not None:
        inputs.append(bias.reshape(1, N))
        in_specs.append(pl.BlockSpec((1, tn_), lambda i, j, k: (0, j)))
    if residual is not None:
        inputs.append(_pad_rows(residual, Mp))
        in_specs.append(pl.BlockSpec((tm_, tn_), lambda i, j, k: (i, j)))

    kernel = _make_mm_kernel(gk, norm, bias is not None, residual is not None,
                             activation, eps, rhs_transposed)
    out = pl.pallas_call(
        kernel,
        out_shape=jax.ShapeDtypeStruct((Mp, N), out_dtype),
        grid=(gm, gn, gk),
        in_specs=in_specs,
        out_specs=pl.BlockSpec((tm_, tn_), lambda i, j, k: (i, j)),
        scratch_shapes=[pltpu.VMEM((tm_, tn_), jnp.float32)],
        compiler_params=pltpu.CompilerParams(
            dimension_semantics=("parallel", "parallel", "arbitrary"),
            vmem_limit_bytes=_VMEM_LIMIT),
    )(*inputs)
    return out[:M] if Mp != M else out


# ----------------------------------------------------------------------------
# Gate/Up matmul with GEGLU fused into the epilogue:
#   out = gelu_tanh(X @ W_gate) * (X @ W_up)      (two fp32 accumulators)
# ----------------------------------------------------------------------------
def _make_gateup_kernel(nsteps, has_norm, eps):
    def kernel(*refs):
        it = iter(refs)
        x_ref = next(it)
        wg_ref = next(it)
        wu_ref = next(it)
        nw_ref = next(it) if has_norm else None
        o_ref = next(it)
        accg_ref = next(it)
        accu_ref = next(it)

        k = pl.program_id(2)

        @pl.when(k == 0)
        def _init():
            accg_ref[...] = jnp.zeros_like(accg_ref)
            accu_ref[...] = jnp.zeros_like(accu_ref)

        x = x_ref[...]
        if has_norm:  # GemmaRMSNorm fused (requires full-K block)
            xf = x.astype(jnp.float32)
            var = jnp.mean(xf * xf, axis=-1, keepdims=True)
            xf = xf * lax.rsqrt(var + eps)
            xf = xf * (1.0 + nw_ref[...].astype(jnp.float32))
            x = xf.astype(x_ref.dtype)

        accg_ref[...] += jnp.dot(x, wg_ref[...], preferred_element_type=jnp.float32)
        accu_ref[...] += jnp.dot(x, wu_ref[...], preferred_element_type=jnp.float32)

        @pl.when(k == nsteps - 1)
        def _finish():
            o_ref[...] = (_gelu_tanh(accg_ref[...]) * accu_ref[...]).astype(o_ref.dtype)

    return kernel


def gateup_geglu_matmul(x, w_gate, w_up, *, norm_w=None, eps=1e-6, out_dtype=None,
                        tm=_DEF_TM, tn=_DEF_TN, tk=_DEF_TK):
    M, K = x.shape
    I = w_gate.shape[1]
    out_dtype = out_dtype or x.dtype
    Mp, tm_ = _choose_row_tiling(M, tm)
    tn_ = _pick_tile(I, tn)
    tk_ = K if norm_w is not None else _pick_tile(K, tk)
    gm, gn, gk = Mp // tm_, I // tn_, K // tk_

    xp = _pad_rows(x, Mp)
    inputs = [xp, w_gate, w_up]
    in_specs = [pl.BlockSpec((tm_, tk_), lambda i, j, k: (i, k)),
                pl.BlockSpec((tk_, tn_), lambda i, j, k: (k, j)),
                pl.BlockSpec((tk_, tn_), lambda i, j, k: (k, j))]
    if norm_w is not None:
        inputs.append(norm_w.reshape(1, K).astype(jnp.float32))
        in_specs.append(pl.BlockSpec((1, tk_), lambda i, j, k: (0, k)))

    out = pl.pallas_call(
        _make_gateup_kernel(gk, norm_w is not None, eps),
        out_shape=jax.ShapeDtypeStruct((Mp, I), out_dtype),
        grid=(gm, gn, gk),
        in_specs=in_specs,
        out_specs=pl.BlockSpec((tm_, tn_), lambda i, j, k: (i, j)),
        scratch_shapes=[pltpu.VMEM((tm_, tn_), jnp.float32),
                        pltpu.VMEM((tm_, tn_), jnp.float32)],
        compiler_params=pltpu.CompilerParams(
            dimension_semantics=("parallel", "parallel", "arbitrary"),
            vmem_limit_bytes=_VMEM_LIMIT),
    )(*inputs)
    return out[:M] if Mp != M else out


# ----------------------------------------------------------------------------
# Flash attention (online softmax) with in-kernel analytic mask generation
# and dead-block skipping.  Grid: (batch*q_heads, q_block, kv_block).
# ----------------------------------------------------------------------------
def _make_flash_kernel(kind, kv_len, window, scale, tq, tkv, nkv_steps, has_flags):
    def kernel(*refs):
        if has_flags:
            q_ref, k_ref, v_ref, fq_ref, fk_ref, o_ref, m_sc, l_sc, acc_sc = refs
        else:
            q_ref, k_ref, v_ref, o_ref, m_sc, l_sc, acc_sc = refs
            fq_ref = fk_ref = None

        qi = pl.program_id(1)
        ki = pl.program_id(2)
        q_start = qi * tq
        k_start = ki * tkv

        @pl.when(ki == 0)
        def _init():
            m_sc[...] = jnp.full_like(m_sc, _NEG_INF)
            l_sc[...] = jnp.zeros_like(l_sc)
            acc_sc[...] = jnp.zeros_like(acc_sc)

        live = k_start < kv_len                       # skip fully-padded kv blocks
        if kind == "local":
            # every entry of this block has (q - k) >= window  ->  dead block
            live = jnp.logical_and(live, q_start - (k_start + tkv - 1) < window)
        # TODO(synk): above-diagonal causal blocks are still computed because
        # the reference mask un-masks image-token pairs above the diagonal;
        # skipping them would need per-block image-presence scalar prefetch.

        @pl.when(live)
        def _compute():
            q = q_ref[0]          # (tq, D), native (bf16) dtype -> MXU
            kk = k_ref[0]         # (tkv, D)
            vv = v_ref[0]         # (tkv, D)
            s = lax.dot_general(q, kk, (((1,), (1,)), ((), ())),
                                preferred_element_type=jnp.float32) * scale

            q_pos = q_start + lax.broadcasted_iota(jnp.int32, (tq, tkv), 0)
            k_pos = k_start + lax.broadcasted_iota(jnp.int32, (tq, tkv), 1)
            valid = k_pos < kv_len
            if kind in ("global", "local"):
                # bidirectional among image tokens (both q and k are image tokens)
                img_pair = (fq_ref[...] * fk_ref[...]) > 0.5      # (tq,1)x(1,tkv)
                allowed = jnp.logical_or(k_pos <= q_pos, img_pair)
                if kind == "local":
                    allowed = jnp.logical_and(allowed, (q_pos - k_pos) < window)
                valid = jnp.logical_and(valid, allowed)
            s = jnp.where(valid, s, _NEG_INF)

            m_prev = m_sc[...]
            m_new = jnp.maximum(m_prev, jnp.max(s, axis=-1, keepdims=True))
            alpha = jnp.exp(m_prev - m_new)
            p = jnp.exp(s - m_new)
            l_sc[...] = alpha * l_sc[...] + jnp.sum(p, axis=-1, keepdims=True)
            acc_sc[...] = alpha * acc_sc[...] + jnp.dot(
                p.astype(vv.dtype), vv, preferred_element_type=jnp.float32)
            m_sc[...] = m_new

        @pl.when(ki == nkv_steps - 1)
        def _finish():
            inv = pl.reciprocal(jnp.maximum(l_sc[...], 1e-30), approx=True)
            o_ref[0] = (acc_sc[...] * inv).astype(o_ref.dtype)

    return kernel


def _flash_flag_inputs(img_flags, S_pad, tq_, tkv_):
    fcol = img_flags.reshape(S_pad, 1).astype(jnp.float32)
    frow = img_flags.reshape(1, S_pad).astype(jnp.float32)
    specs = [pl.BlockSpec((tq_, 1), lambda bh, qi, ki: (qi, 0)),
             pl.BlockSpec((1, tkv_), lambda bh, qi, ki: (0, ki))]
    return [fcol, frow], specs


def flash_attention_packed(qkv3, nq, nkv, D, *, kind, kv_len, scale,
                           window=0, img_flags=None, tq=_DEF_TQ, tkv=_DEF_TKV):
    """Flash attention reading Q/K/V head slices directly out of the packed
    (B, S, (nq + 2*nkv)*D) QKV projection via BlockSpec column index_maps and
    writing (tq, D) blocks straight into the (B, S, nq*D) output (no XLA head
    split/merge transposes).  Requires D % 128 == 0 (lane-dense head slices)."""
    B, S_pad, _ = qkv3.shape
    tq_ = _pick_tile(S_pad, tq)
    tkv_ = _pick_tile(S_pad, tkv)
    gq, gkv = S_pad // tq_, S_pad // tkv_
    group = max(nq // nkv, 1)
    has_flags = kind in ("global", "local")

    in_specs = [
        pl.BlockSpec((1, tq_, D), lambda bh, qi, ki: (bh // nq, qi, bh % nq)),
        pl.BlockSpec((1, tkv_, D),
                     lambda bh, qi, ki: (bh // nq, ki, nq + (bh % nq) // group)),
        pl.BlockSpec((1, tkv_, D),
                     lambda bh, qi, ki: (bh // nq, ki, nq + nkv + (bh % nq) // group)),
    ]
    inputs = [qkv3, qkv3, qkv3]
    if has_flags:
        finputs, fspecs = _flash_flag_inputs(img_flags, S_pad, tq_, tkv_)
        inputs += finputs
        in_specs += fspecs

    kernel = _make_flash_kernel(kind, kv_len, window, scale, tq_, tkv_, gkv, has_flags)
    return pl.pallas_call(
        kernel,
        out_shape=jax.ShapeDtypeStruct((B, S_pad, nq * D), qkv3.dtype),
        grid=(B * nq, gq, gkv),
        in_specs=in_specs,
        out_specs=pl.BlockSpec((1, tq_, D), lambda bh, qi, ki: (bh // nq, qi, bh % nq)),
        scratch_shapes=[pltpu.VMEM((tq_, 1), jnp.float32),
                        pltpu.VMEM((tq_, 1), jnp.float32),
                        pltpu.VMEM((tq_, D), jnp.float32)],
        compiler_params=pltpu.CompilerParams(
            dimension_semantics=("parallel", "parallel", "arbitrary"),
            vmem_limit_bytes=_VMEM_LIMIT),
    )(*inputs)


def flash_attention_split(q, k, v, *, kind, kv_len, scale, window=0,
                          img_flags=None, tq=_DEF_TQ, tkv=_DEF_TKV):
    """Fallback flash attention over pre-split (batch*heads, S, D) tensors
    (used when head_dim is not lane-dense, e.g. Siglip's 72)."""
    BH, S_pad, D = q.shape
    tq_ = _pick_tile(S_pad, tq)
    tkv_ = _pick_tile(S_pad, tkv)
    gq, gkv = S_pad // tq_, S_pad // tkv_
    has_flags = kind in ("global", "local")

    in_specs = [pl.BlockSpec((1, tq_, D), lambda b, qi, ki: (b, qi, 0)),
                pl.BlockSpec((1, tkv_, D), lambda b, qi, ki: (b, ki, 0)),
                pl.BlockSpec((1, tkv_, D), lambda b, qi, ki: (b, ki, 0))]
    inputs = [q, k, v]
    if has_flags:
        finputs, fspecs = _flash_flag_inputs(img_flags, S_pad, tq_, tkv_)
        inputs += finputs
        in_specs += fspecs

    kernel = _make_flash_kernel(kind, kv_len, window, scale, tq_, tkv_, gkv, has_flags)
    return pl.pallas_call(
        kernel,
        out_shape=jax.ShapeDtypeStruct((BH, S_pad, D), q.dtype),
        grid=(BH, gq, gkv),
        in_specs=in_specs,
        out_specs=pl.BlockSpec((1, tq_, D), lambda b, qi, ki: (b, qi, 0)),
        scratch_shapes=[pltpu.VMEM((tq_, 1), jnp.float32),
                        pltpu.VMEM((tq_, 1), jnp.float32),
                        pltpu.VMEM((tq_, D), jnp.float32)],
        compiler_params=pltpu.CompilerParams(
            dimension_semantics=("parallel", "parallel", "arbitrary"),
            vmem_limit_bytes=_VMEM_LIMIT),
    )(*inputs)


# ----------------------------------------------------------------------------
# Standalone LayerNorm (vision pre/post norms on the residual stream)
# ----------------------------------------------------------------------------
def _layernorm_kernel(x_ref, g_ref, b_ref, o_ref, *, eps):
    x = x_ref[...].astype(jnp.float32)
    mu = jnp.mean(x, axis=-1, keepdims=True)
    var = jnp.mean(jnp.square(x - mu), axis=-1, keepdims=True)
    y = (x - mu) * lax.rsqrt(var + eps)
    y = y * g_ref[...].astype(jnp.float32) + b_ref[...].astype(jnp.float32)
    o_ref[...] = y.astype(o_ref.dtype)


def layernorm(x, g, b, eps):
    M, H = x.shape
    Mp, tm = _choose_row_tiling(M, _DEF_TM)
    xp = _pad_rows(x, Mp)
    out = pl.pallas_call(
        partial(_layernorm_kernel, eps=eps),
        out_shape=jax.ShapeDtypeStruct((Mp, H), x.dtype),
        grid=(Mp // tm,),
        in_specs=[pl.BlockSpec((tm, H), lambda i: (i, 0)),
                  pl.BlockSpec((1, H), lambda i: (0, 0)),
                  pl.BlockSpec((1, H), lambda i: (0, 0))],
        out_specs=pl.BlockSpec((tm, H), lambda i: (i, 0)),
        compiler_params=pltpu.CompilerParams(
            dimension_semantics=("parallel",), vmem_limit_bytes=_VMEM_LIMIT),
    )(xp, g.reshape(1, H).astype(jnp.float32), b.reshape(1, H).astype(jnp.float32))
    return out[:M] if Mp != M else out


# ----------------------------------------------------------------------------
# AvgPool2d over the patch grid: pool matrix generated in-kernel from iota
# (no HBM pool-matrix stream), one image per grid step.
# ----------------------------------------------------------------------------
def _make_pool_kernel(ppi, tps):
    k = ppi // tps
    T = tps * tps
    S = ppi * ppi
    inv = 1.0 / float(k * k)

    def kernel(x_ref, o_ref):
        # TODO(synk): a reshape-and-mean VPU formulation would avoid the MXU
        # work entirely; kept as an iota-generated matmul for robust lowering.
        x = x_ref[0]                                           # (S, H)
        t_idx = lax.broadcasted_iota(jnp.int32, (T, S), 0)
        s_idx = lax.broadcasted_iota(jnp.int32, (T, S), 1)
        same_row = (s_idx // ppi) // k == t_idx // tps
        same_col = (s_idx % ppi) // k == t_idx % tps
        pm = jnp.where(jnp.logical_and(same_row, same_col), inv, 0.0).astype(x.dtype)
        o_ref[0] = jnp.dot(pm, x, preferred_element_type=jnp.float32).astype(o_ref.dtype)

    return kernel


def avg_pool_tokens(vis, ppi, tps):
    B, S, H = vis.shape
    T = tps * tps
    return pl.pallas_call(
        _make_pool_kernel(ppi, tps),
        out_shape=jax.ShapeDtypeStruct((B, T, H), vis.dtype),
        grid=(B,),
        in_specs=[pl.BlockSpec((1, S, H), lambda b: (b, 0, 0))],
        out_specs=pl.BlockSpec((1, T, H), lambda b: (b, 0, 0)),
        compiler_params=pltpu.CompilerParams(
            dimension_semantics=("parallel",), vmem_limit_bytes=_VMEM_LIMIT),
    )(vis)


# ----------------------------------------------------------------------------
# Head packing helpers (XLA data movement; only used on the fallback path)
# ----------------------------------------------------------------------------
def _split_heads_gqa(qkv2d, B, S, nq, nkv, D):
    qkv = qkv2d.reshape(B, S, (nq + 2 * nkv) * D)
    q = qkv[:, :, :nq * D].reshape(B, S, nq, D)
    k = qkv[:, :, nq * D:(nq + nkv) * D].reshape(B, S, nkv, D)
    v = qkv[:, :, (nq + nkv) * D:].reshape(B, S, nkv, D)
    if nkv != nq:
        rep = nq // nkv
        k = jnp.repeat(k, rep, axis=2)
        v = jnp.repeat(v, rep, axis=2)

    def to_bh(t):
        return jnp.transpose(t, (0, 2, 1, 3)).reshape(B * nq, S, D)

    return to_bh(q), to_bh(k), to_bh(v)


def _merge_heads(o, B, S, nh, D):
    return jnp.transpose(o.reshape(B, nh, S, D), (0, 2, 1, 3)).reshape(B * S, nh * D)


# ----------------------------------------------------------------------------
# SiglipVisionModel
# ----------------------------------------------------------------------------
def vision_layer(x, p, num_heads, ln_eps, kv_len):
    B, S_pad, H = x.shape
    D = H // num_heads
    x2d = x.reshape(B * S_pad, H)

    # attention block: LayerNorm fused into the packed QKV projection
    qkv = fused_matmul(x2d, p["wqkv"], p["bqkv"], norm="layer",
                       norm_g=p["ln1_g"], norm_b=p["ln1_b"], eps=ln_eps)
    if D % 128 == 0:
        o = flash_attention_packed(qkv.reshape(B, S_pad, 3 * H), num_heads, num_heads,
                                   D, kind="none", kv_len=kv_len, scale=D ** -0.5)
        o2d = o.reshape(B * S_pad, H)
    else:
        # TODO(synk): lane-dense route would zero-pad head_dim (e.g. 72 -> 128);
        # fall back to explicit head split/merge transposes instead.
        q, k, v = _split_heads_gqa(qkv, B, S_pad, num_heads, num_heads, D)
        o = flash_attention_split(q, k, v, kind="none", kv_len=kv_len, scale=D ** -0.5)
        o2d = _merge_heads(o, B, S_pad, num_heads, D)
    x2d = fused_matmul(o2d, p["wo"], p["bo"], residual=x2d)

    # MLP block: LayerNorm + exact-erf GELU fused into fc1; residual into fc2
    h1 = fused_matmul(x2d, p["fc1_w"], p["fc1_b"], norm="layer",
                      norm_g=p["ln2_g"], norm_b=p["ln2_b"], eps=ln_eps,
                      activation="gelu_erf")
    x2d = fused_matmul(h1, p["fc2_w"], p["fc2_b"], residual=x2d)
    return x2d.reshape(B, S_pad, H)


def vision_tower(pixel_values, p, cfg):
    B, C, Himg, Wimg = pixel_values.shape
    ps = cfg["patch_size"]
    P = Himg // ps
    vh = cfg["vision_hidden"]
    ln_eps = cfg["layer_norm_eps"]

    # stride-ps Conv2d (no bias) == im2col + matmul; patch vector order (c,kh,kw)
    # TODO(synk): im2col + pos_emb add are XLA glue; could be folded into the
    # patch matmul's index_map / epilogue.
    patches = pixel_values.reshape(B, C, P, ps, P, ps)
    patches = jnp.transpose(patches, (0, 2, 4, 1, 3, 5)).reshape(B * P * P, C * ps * ps)
    patches = patches.astype(p["patch_w"].dtype)
    x = fused_matmul(patches, p["patch_w"]).reshape(B, P * P, vh)

    cls = jnp.broadcast_to(p["class_emb"], (B, 1, vh)).astype(x.dtype)
    x = jnp.concatenate([cls, x], axis=1) + p["pos_emb"].astype(x.dtype)
    S = P * P + 1
    S_pad = _seq_pad(S)
    if S_pad != S:  # pad the sequence so flash/matmul tiles stay lane/VMEM-friendly
        x = jnp.pad(x, ((0, 0), (0, S_pad - S), (0, 0)))

    x = layernorm(x.reshape(B * S_pad, vh), p["pre_ln_g"], p["pre_ln_b"], eps=ln_eps)
    x = x.reshape(B, S_pad, vh)
    for lp in p["layers"]:
        x = vision_layer(x, lp, cfg["vision_heads"], ln_eps, kv_len=S)
    x = layernorm(x.reshape(B * S_pad, vh), p["post_ln_g"], p["post_ln_b"], eps=ln_eps)
    return x.reshape(B, S_pad, vh)[:, :S]


# ----------------------------------------------------------------------------
# Gemma3MultiModalProjector
# ----------------------------------------------------------------------------
def multimodal_projector(vision_outputs, p, cfg):
    B, S, H = vision_outputs.shape
    ppi = cfg["image_size"] // cfg["patch_size"]
    tps = int(cfg["mm_tokens_per_image"] ** 0.5)
    T = tps * tps
    pooled = avg_pool_tokens(vision_outputs, ppi, tps).reshape(B * T, H)
    # mm_soft_emb_norm (GemmaRMSNorm) fused into the projection matmul
    proj = fused_matmul(pooled, p["proj_w"], norm="rms", norm_w=p["norm_w"],
                        eps=cfg["rms_norm_eps"])
    return proj.reshape(B, T, cfg["text_hidden"])


# ----------------------------------------------------------------------------
# Simplified Gemma3 text decoder + tied-embedding logits
# ----------------------------------------------------------------------------
def text_layer(x2d, lp, kind, img_flags, kv_len, cfg):
    S_pad, H = x2d.shape
    nq, nkv = cfg["text_heads"], cfg["text_kv_heads"]
    D = H // nq
    eps = cfg["rms_norm_eps"]
    window = cfg["sliding_window"]

    # RMSNorm fused into the packed QKV projection
    qkv = fused_matmul(x2d, lp["wqkv"], norm="rms", norm_w=lp["input_norm"], eps=eps)
    if D % 128 == 0:
        o = flash_attention_packed(qkv.reshape(1, S_pad, -1), nq, nkv, D,
                                   kind=kind, kv_len=kv_len, window=window,
                                   img_flags=img_flags, scale=D ** -0.5)
        o2d = o.reshape(S_pad, H)
    else:
        q, k, v = _split_heads_gqa(qkv, 1, S_pad, nq, nkv, D)
        o = flash_attention_split(q, k, v, kind=kind, kv_len=kv_len, window=window,
                                  img_flags=img_flags, scale=D ** -0.5)
        o2d = _merge_heads(o, 1, S_pad, nq, D)
    x2d = fused_matmul(o2d, lp["wo"], residual=x2d)

    # RMSNorm + gate/up matmul + GEGLU epilogue, then K-tiled down projection
    act = gateup_geglu_matmul(x2d, lp["w_gate"], lp["w_up"],
                              norm_w=lp["post_norm"], eps=eps)
    x2d = fused_matmul(act, lp["w_down"], residual=x2d)
    return x2d


def text_model(inputs_embeds, img_flags, kv_len, p, cfg):
    # TODO(synk): Gemma3Model is external to the reference file; this is a
    # simplified Gemma decoder (no RoPE / QK-norm, alternating local/global
    # masks instead of the real 5-local:1-global pattern).
    S_pad, H = inputs_embeds.shape
    x = inputs_embeds * jnp.asarray(math.sqrt(H), inputs_embeds.dtype)
    for li, lp in enumerate(p["layers"]):
        kind = "local" if li % 2 == 0 else "global"
        x = text_layer(x, lp, kind, img_flags, kv_len, cfg)
    return x  # final RMSNorm is fused into the logits matmul prologue


# ----------------------------------------------------------------------------
# Full forward (extend/prefill path with images)
# ----------------------------------------------------------------------------
def gemma3_forward(params, cfg, input_ids, positions, pixel_values,
                   image_offsets, prefix_len=0, extend_start_loc=0):
    dtype = params["text"]["embed"].dtype

    # 1) vision tower on pixel_values (NCHW)
    vis = vision_tower(pixel_values.astype(dtype), params["vision"], cfg)
    # drop the class token so the projector sees exactly ppi^2 patch tokens
    image_embeds = multimodal_projector(vis[:, 1:, :], params["projector"], cfg)

    # 2) token embedding (clamped ids) + splice of image embeddings
    ids = jnp.clip(input_ids, 0, cfg["vocab_size"] - 1)
    embeds = jnp.take(params["text"]["embed"], ids, axis=0)
    img_flat = image_embeds.reshape(-1, cfg["text_hidden"])
    n_img = cfg["mm_tokens_per_image"]
    off = 0
    # TODO(synk): real serving would scatter image embeddings with device-side
    # offsets instead of a host loop over static offsets.
    for image_offset in image_offsets:
        if image_offset < prefix_len:
            continue
        left = extend_start_loc + (image_offset - prefix_len + 1)
        embeds = lax.dynamic_update_slice(embeds, img_flat[off:off + n_img], (left, 0))
        off += n_img

    # 3) analytic mask inputs: a (S,) image-token flag row; the causal /
    #    sliding-window / image-bidirectional mask itself is built in-kernel.
    S = int(input_ids.shape[0])
    S_pad = _seq_pad(S)
    img_flags = (input_ids == cfg["image_token_index"]).astype(jnp.float32)
    if S_pad != S:
        img_flags = jnp.pad(img_flags, (0, S_pad - S))
        embeds = jnp.pad(embeds, ((0, S_pad - S), (0, 0)))

    # 4) text decoder + tied-embedding logits; final RMSNorm fused into the
    #    vocab-tiled logits matmul that contracts against embed rows directly.
    # TODO(synk): fp8/int8 logits weights and sample-position-only logits would
    # further cut the HBM-bound logits step.
    hidden = text_model(embeds, img_flags, S, params["text"], cfg)
    logits = fused_matmul(hidden[:S], params["text"]["embed"], norm="rms",
                          norm_w=params["text"]["final_norm"],
                          eps=cfg["rms_norm_eps"], rhs_transposed=True,
                          out_dtype=jnp.float32, tn=512)
    return logits


# ----------------------------------------------------------------------------
# Deterministic parameter init (synthetic; no checkpoint loading)
# ----------------------------------------------------------------------------
def init_params(key, cfg, dtype=jnp.bfloat16):
    vh, vi = cfg["vision_hidden"], cfg["vision_intermediate"]
    th, ti = cfg["text_hidden"], cfg["text_intermediate"]
    nq, nkv = cfg["text_heads"], cfg["text_kv_heads"]
    D = th // nq
    ps = cfg["patch_size"]
    P = cfg["image_size"] // ps
    num_patches = P * P
    keys = iter(jax.random.split(key, 512))
    nk = lambda: next(keys)

    def normal(shape, scale=0.02):
        return (scale * jax.random.normal(nk(), shape, jnp.float32)).astype(dtype)

    vision_layers = []
    for _ in range(cfg["vision_layers"]):
        vision_layers.append(dict(
            ln1_g=jnp.ones((vh,), jnp.float32), ln1_b=jnp.zeros((vh,), jnp.float32),
            wqkv=normal((vh, 3 * vh)), bqkv=jnp.zeros((3 * vh,), dtype),
            wo=normal((vh, vh)), bo=jnp.zeros((vh,), dtype),
            ln2_g=jnp.ones((vh,), jnp.float32), ln2_b=jnp.zeros((vh,), jnp.float32),
            fc1_w=normal((vh, vi)), fc1_b=jnp.zeros((vi,), dtype),
            fc2_w=normal((vi, vh)), fc2_b=jnp.zeros((vh,), dtype),
        ))
    vision = dict(
        patch_w=normal((3 * ps * ps, vh)),                 # Conv2d weight, (c,kh,kw)-major
        class_emb=normal((1, 1, vh), 1.0),
        pos_emb=normal((1, num_patches + 1, vh), 1.0),
        pre_ln_g=jnp.ones((vh,), jnp.float32), pre_ln_b=jnp.zeros((vh,), jnp.float32),
        post_ln_g=jnp.ones((vh,), jnp.float32), post_ln_b=jnp.zeros((vh,), jnp.float32),
        layers=vision_layers,
    )
    projector = dict(
        norm_w=jnp.zeros((vh,), jnp.float32),              # GemmaRMSNorm weight
        proj_w=normal((vh, th)),                           # mm_input_projection_weight
    )
    text_layers = []
    for _ in range(cfg["text_layers"]):
        text_layers.append(dict(
            input_norm=jnp.zeros((th,), jnp.float32),
            wqkv=normal((th, (nq + 2 * nkv) * D)),         # [q heads | k heads | v heads]
            wo=normal((nq * D, th)),
            post_norm=jnp.zeros((th,), jnp.float32),
            w_gate=normal((th, ti)), w_up=normal((th, ti)), w_down=normal((ti, th)),
        ))
    text = dict(
        embed=normal((cfg["vocab_size"], th)),
        layers=text_layers,
        final_norm=jnp.zeros((th,), jnp.float32),
    )
    return dict(vision=vision, projector=projector, text=text)


if __name__ == "__main__":
    cfg = dict(
        image_size=32, patch_size=8,
        vision_hidden=256, vision_intermediate=512, vision_heads=4, vision_layers=2,
        mm_tokens_per_image=4, rms_norm_eps=1e-6, layer_norm_eps=1e-6,
        text_hidden=256, text_intermediate=512, text_heads=2, text_kv_heads=1,
        text_layers=2, vocab_size=256, image_token_index=7, sliding_window=4,
    )
    root = jax.random.PRNGKey(0)
    kparam, kpix = jax.random.split(root)
    params = init_params(kparam, cfg, dtype=jnp.bfloat16)

    # one image: (num_images, C, H, W) NCHW
    pixel_values = jax.random.normal(kpix, (1, 3, cfg["image_size"], cfg["image_size"]),
                                     jnp.float32)
    seq_len = 8
    # image placeholder tokens occupy positions 2..5 (image_offset=1 -> left=2)
    input_ids = jnp.array([2, 3, 7, 7, 7, 7, 5, 6], dtype=jnp.int32)
    positions = jnp.arange(seq_len, dtype=jnp.int32)

    logits = gemma3_forward(params, cfg, input_ids, positions, pixel_values,
                            image_offsets=[1], prefix_len=0, extend_start_loc=0)
    jax.block_until_ready(logits)
    assert logits.shape == (seq_len, cfg["vocab_size"])
    assert bool(jnp.all(jnp.isfinite(logits)))
    print("KERNEL_OK")
</pallas_src>

<mosaic_0001>
module attributes {stable_mosaic.version = 11 : i64} {
  func.func @kernel(%arg0: i32, %arg1: i32, %arg2: i32, %arg3: memref<16x192xbf16, #tpu.memory_space<vmem>>, %arg4: memref<192x256xbf16, #tpu.memory_space<vmem>>, %arg5: memref<16x256xbf16, #tpu.memory_space<vmem>>, %arg6: memref<16x256xf32, #tpu.memory_space<vmem>>) attributes {dimension_semantics = [#tpu.dimension_semantics<parallel>, #tpu.dimension_semantics<parallel>, #tpu.dimension_semantics<arbitrary>], iteration_bounds = array<i64: 1, 1, 1>, scalar_prefetch = 0 : i64, scratch_operands = 1 : i64, tpu.core_type = #tpu.core_type<tc>, window_params = [{transform_indices = @transform_0, window_bounds = array<i64: 16, 192>}, {transform_indices = @transform_1, window_bounds = array<i64: 192, 256>}, {transform_indices = @transform_2, window_bounds = array<i64: 16, 256>}]} {
    %c0_i32 = arith.constant 0 : i32
    %0 = arith.cmpi eq, %arg2, %c0_i32 : i32
    %1 = arith.extui %0 : i1 to i32
    %c0_i32_0 = arith.constant 0 : i32
    %2 = arith.cmpi ne, %1, %c0_i32_0 : i32
    scf.if %2 {
      %cst_10 = arith.constant 0.000000e+00 : f32
      %12 = vector.broadcast %cst_10 : f32 to vector<16x256xf32>
      %c0_11 = arith.constant 0 : index
      %c0_12 = arith.constant 0 : index
      %13 = vector.load %arg6[%c0_11, %c0_12] : memref<16x256xf32, #tpu.memory_space<vmem>>, vector<16x256xf32>
      tpu.vector_store %arg6[%c0_11, %c0_12], %12 {strides = array<i32>} : memref<16x256xf32, #tpu.memory_space<vmem>>, vector<16x256xf32>,
    } else {
    }
    %c0 = arith.constant 0 : index
    %c0_1 = arith.constant 0 : index
    %3 = vector.load %arg3[%c0, %c0_1] : memref<16x192xbf16, #tpu.memory_space<vmem>>, vector<16x192xbf16>
    %c0_2 = arith.constant 0 : index
    %c0_3 = arith.constant 0 : index
    %4 = vector.load %arg4[%c0_2, %c0_3] : memref<192x256xbf16, #tpu.memory_space<vmem>>, vector<192x256xbf16>
    %cst = arith.constant dense<0.000000e+00> : vector<16x256xf32>
    %5 = tpu.matmul %3, %4, %cst {dimension_numbers = #tpu.dot_dimension_numbers<[1], [0], [0], [1], [0, 0, 1, 1], [], []>} : vector<16x192xbf16>, vector<192x256xbf16>, vector<16x256xf32> -> vector<16x256xf32>
    %c0_4 = arith.constant 0 : index
    %c0_5 = arith.constant 0 : index
    %6 = vector.load %arg6[%c0_4, %c0_5] : memref<16x256xf32, #tpu.memory_space<vmem>>, vector<16x256xf32>
    %7 = arith.addf %6, %5 : vector<16x256xf32>
    %c0_6 = arith.constant 0 : index
    %c0_7 = arith.constant 0 : index
    %8 = vector.load %arg6[%c0_6, %c0_7] : memref<16x256xf32, #tpu.memory_space<vmem>>, vector<16x256xf32>
    tpu.vector_store %arg6[%c0_6, %c0_7], %7 {strides = array<i32>} : memref<16x256xf32, #tpu.memory_space<vmem>>, vector<16x256xf32>,
    %c0_i32_8 = arith.constant 0 : i32
    %9 = arith.cmpi eq, %arg2, %c0_i32_8 : i32
    %10 = arith.extui %9 : i1 to i32
    %c0_i32_9 = arith.constant 0 : i32
    %11 = arith.cmpi ne, %10, %c0_i32_9 : i32
    scf.if %11 {
      %c0_10 = arith.constant 0 : index
      %c0_11 = arith.constant 0 : index
      %12 = vector.load %arg6[%c0_10, %c0_11] : memref<16x256xf32, #tpu.memory_space<vmem>>, vector<16x256xf32>
      %13 = arith.truncf %12 : vector<16x256xf32> to vector<16x256xbf16>
      %c0_12 = arith.constant 0 : index
      %c0_13 = arith.constant 0 : index
      %14 = vector.load %arg5[%c0_12, %c0_13] : memref<16x256xbf16, #tpu.memory_space<vmem>>, vector<16x256xbf16>
      tpu.vector_store %arg5[%c0_12, %c0_13], %13 {strides = array<i32>} : memref<16x256xbf16, #tpu.memory_space<vmem>>, vector<16x256xbf16>,
    } else {
    }
    return
  }
  func.func @transform_0(%arg0: i32, %arg1: i32, %arg2: i32) -> (i32, i32) {
    %c0_i32 = arith.constant 0 : i32
    return %arg0, %arg2 : i32, i32
  }
  func.func @transform_1(%arg0: i32, %arg1: i32, %arg2: i32) -> (i32, i32) {
    %c0_i32 = arith.constant 0 : i32
    return %arg2, %arg1 : i32, i32
  }
  func.func @transform_2(%arg0: i32, %arg1: i32, %arg2: i32) -> (i32, i32) {
    %c0_i32 = arith.constant 0 : i32
    return %arg0, %arg1 : i32, i32
  }
}

</mosaic_0001>

<bundles_post_ra>
// kernel: tpu_custom_call.1
= control target key start
LH: loop header
LB: loop body
LE: loop exit
PB: predicated region body
PF: predicated region fallthrough
CT: control target
= control target key end

     0   :  { %7 = vsyncpa [#allocation4], 0  ;;  %s514_s0 = inlined_call_operand.hbm [shape: bf16[16,192], index: 0, kind: input, shape index: {}]   ;;  %s515_s1 = inlined_call_operand.hbm [shape: bf16[192,256], index: 1, kind: input, shape index: {}]   ;;  %s516_s2 = inlined_call_operand.hbm [shape: bf16[16,256], index: 2, kind: output, shape index: {}]  }
   0x1   :  { %8 = vsyncpa [#allocation7], 0 }
   0x2   :  { %9 = vsyncpa [#allocation5], 0  ;;  %s449_s9 = smov [#allocation3]   ;;  %s377_s13 = scalar_lea.hbm %s514_s0, 256 }
   0x3   :  { %s15_s10 = sshll.u32 %s449_s9, 4  ;;  %p378_p0 = scmp.ne.s32.totalorder %s514_s0, %s377_s13  ;;  %s16_s10 = int_to_ptr.vmem [resolvable:$true] %s15_s10 }
   0x4   :  { %p381_p1 = scmp.lt.u32.totalorder %s377_s13, %s514_s0 }
   0x6   :  { %p383_p2 = pnand %p381_p1, %p378_p0 }
   0x8   :  { %386 = shalt.err (!%p383_p2)
}
   0x9   :  { %s387_s18 = scalar_lea.vmem %s16_s10, 256  ;;  %p392_p4 = scmp.lt.s32.totalorder %s16_s10, %s16_s10 }
   0xa   :  { %p388_p3 = scmp.ne.s32.totalorder %s16_s10, %s387_s18  ;;  %p393_p5 = scmp.lt.s32.totalorder %s387_s18, %s387_s18 }
   0xc   :  { %p394_p6 = por %p393_p5, %p392_p4 }
   0xe   :  { %p395_p7 = pnand %p394_p6, %p388_p3 }
  0x10   :  { %398 = shalt.err (!%p395_p7)
}
  0x11   :  { %s450_s19 = smov 128   ;;  %s451_s20 = smov 8  }
  0x12   :  { %21 = dma.hbm_to_vmem [thread:$0]  %s514_s0, 256, %s16_s10, [#allocation4], %s450_s19, %s450_s19, %s451_s20  }
  0x13   :  { %s452_s23 = smov [#allocation6]   ;;  %s399_s27 = scalar_lea.hbm %s515_s1, 3072 }
  0x14   :  { %s27_s24 = sshll.u32 %s452_s23, 4  ;;  %p400_p8 = scmp.ne.s32.totalorder %s515_s1, %s399_s27  ;;  %s28_s24 = int_to_ptr.vmem [resolvable:$true] %s27_s24 }
  0x15   :  { %p403_p9 = scmp.lt.u32.totalorder %s399_s27, %s515_s1 }
  0x17   :  { %p405_p10 = pnand %p403_p9, %p400_p8 }
  0x19   :  { %408 = shalt.err (!%p405_p10)
}
  0x1a   :  { %s409_s4 = scalar_lea.vmem %s28_s24, 3072  ;;  %p414_p12 = scmp.lt.s32.totalorder %s28_s24, %s28_s24 }
  0x1b   :  { %p410_p11 = scmp.ne.s32.totalorder %s28_s24, %s409_s4  ;;  %p415_p13 = scmp.lt.s32.totalorder %s409_s4, %s409_s4 }
  0x1d   :  { %p416_p0 = por %p415_p13, %p414_p12 }
  0x1f   :  { %p417_p1 = pnand %p416_p0, %p410_p11 }
  0x21   :  { %420 = shalt.err (!%p417_p1)
}
  0x22   :  { %33 = dma.hbm_to_vmem [thread:$0]  %s515_s1, 3072, %s28_s24, [#allocation7], %s450_s19, %s450_s19, %s451_s20  }
  0x23   :  { %443 = dma.done.wait [#allocation4], 256  }
  0x24   :  { %444 = vsyncadd [#allocation4], 4294967040 }
  0x25   :  { %445 = dma.done.wait [#allocation7], 3072  }
  0x26   :  { %446 = vsyncadd [#allocation7], 4294964224  ;;  %v338_v0 = vld [vmem:[#allocation6 + $0x4] ss:$8 sps:$4 sm:$0xff]   ;;  %v340_v1 = vld [vmem:[#allocation6] ss:$8 sps:$4 sm:$0xff]  }
  0x27   :  { %208 = vmatprep.subr.bf16.mxu0 %v338_v0  ;;  %v341_v2 = vld [vmem:[#allocation6 + $0x14] ss:$8 sps:$4 sm:$0xff]   ;;  %v343_v3 = vld [vmem:[#allocation6 + $0x10] ss:$8 sps:$4 sm:$0xff]   ;;  %v344_v4 = vld [vmem:[#allocation6 + $0x24] ss:$8 sps:$4 sm:$0xff]  }
  0x28   :  { %209 = vmatpush1.bf16.msra.mxu0 %v340_v1  ;;  %v346_v5 = vld [vmem:[#allocation6 + $0x20] ss:$8 sps:$4 sm:$0xff]   ;;  %v347_v6 = vld [vmem:[#allocation6 + $0x34] ss:$8 sps:$4 sm:$0xff]   ;;  %v349_v7 = vld [vmem:[#allocation6 + $0x30] ss:$8 sps:$4 sm:$0xff]  }
  0x29   :  { %210 = vmatprep.subr.bf16.mxu0 %v341_v2  ;;  %v350_v8 = vld [vmem:[#allocation6 + $0x44] ss:$8 sps:$4 sm:$0xff]   ;;  %v352_v9 = vld [vmem:[#allocation6 + $0x40] ss:$8 sps:$4 sm:$0xff]   ;;  %v353_v10 = vld [vmem:[#allocation6 + $0x54] ss:$8 sps:$4 sm:$0xff]  }
  0x2a   :  { %vm204_vm0 = vcmask 523264   ;;  %v376_v11 = vld [vmem:[#allocation3 + $0x4] ss:$8 sps:$4 sm:$0xff]   ;;  %v355_v12 = vld [vmem:[#allocation6 + $0x50] ss:$8 sps:$4 sm:$0xff]   ;;  %s453_s1 = smov [#allocation8]  }
  0x2b   :  { %328 = vmatprep.mubr.msk.bf16.mxu0 %vm204_vm0, %v376_v11  ;;  %v356_v13 = vld [vmem:[#allocation6 + $0x64] ss:$8 sps:$4 sm:$0xff]   ;;  %v358_v14 = vld [vmem:[#allocation6 + $0x60] ss:$8 sps:$4 sm:$0xff]   ;;  %v359_v15 = vld [vmem:[#allocation6 + $0x74] ss:$8 sps:$4 sm:$0xff]  }
  0x2c   :  { %211 = vmatpush1.bf16.msra.mxu0 %v343_v3  ;;  %v361_v16 = vld [vmem:[#allocation6 + $0x70] ss:$8 sps:$4 sm:$0xff]   ;;  %v362_v17 = vld [vmem:[#allocation6 + $0x84] ss:$8 sps:$4 sm:$0xff]   ;;  %v364_v18 = vld [vmem:[#allocation6 + $0x80] ss:$8 sps:$4 sm:$0xff]  }
  0x2d   :  { %212 = vmatprep.subr.bf16.mxu0 %v344_v4  ;;  %v365_v19 = vld [vmem:[#allocation6 + $0x94] ss:$8 sps:$4 sm:$0xff]   ;;  %v367_v20 = vld [vmem:[#allocation6 + $0x90] ss:$8 sps:$4 sm:$0xff]   ;;  %v368_v21 = vld [vmem:[#allocation6 + $0xa4] ss:$8 sps:$4 sm:$0xff]  }
  0x2e   :  { %v370_v22 = vld [vmem:[#allocation6 + $0xa0] ss:$8 sps:$4 sm:$0xff]   ;;  %v371_v23 = vld [vmem:[#allocation6 + $0xb4] ss:$8 sps:$4 sm:$0xff]   ;;  %v373_v24 = vld [vmem:[#allocation6 + $0xb0] ss:$8 sps:$4 sm:$0xff]  }
  0x2f   :  { %v374_v25 = vld [vmem:[#allocation3] ss:$8 sps:$4 sm:$0xff]   ;;  %s289_s6 = sshll.u32 %s453_s1, 4  ;;  %s290_s6 = int_to_ptr.vmem [resolvable:$true] %s289_s6 }
  0x30   :  { %213 = vmatpush1.bf16.msra.mxu0 %v346_v5  ;;  %s421_s7 = scalar_lea.vmem %s290_s6, 256  ;;  %p426_p3 = scmp.lt.s32.totalorder %s290_s6, %s290_s6 }
  0x31   :  { %214 = vmatprep.subr.bf16.mxu0 %v347_v6  ;;  %p422_p2 = scmp.ne.s32.totalorder %s290_s6, %s421_s7  ;;  %p427_p4 = scmp.lt.s32.totalorder %s421_s7, %s421_s7 }
  0x33   :  { %p428_p5 = por %p427_p4, %p426_p3 }
  0x34   :  { %215 = vmatpush1.bf16.msra.mxu0 %v349_v7 }
  0x35   :  { %216 = vmatprep.subr.bf16.mxu0 %v350_v8  ;;  %p429_p6 = pnand %p428_p5, %p422_p2 }
  0x38   :  { %217 = vmatpush1.bf16.msra.mxu0 %v352_v9 }
  0x39   :  { %218 = vmatprep.subr.bf16.mxu0 %v353_v10 }
  0x3c   :  { %219 = vmatpush1.bf16.msra.mxu0 %v355_v12 }
  0x3d   :  { %220 = vmatprep.subr.bf16.mxu0 %v356_v13 }
  0x40   :  { %221 = vmatpush1.bf16.msra.mxu0 %v358_v14 }
  0x41   :  { %222 = vmatprep.subr.bf16.mxu0 %v359_v15 }
  0x44   :  { %223 = vmatpush1.bf16.msra.mxu0 %v361_v16 }
  0x45   :  { %224 = vmatprep.subr.bf16.mxu0 %v362_v17 }
  0x48   :  { %225 = vmatpush1.bf16.msra.mxu0 %v364_v18 }
  0x49   :  { %226 = vmatprep.subr.bf16.mxu0 %v365_v19 }
  0x4c   :  { %227 = vmatpush1.bf16.msra.mxu0 %v367_v20 }
  0x4d   :  { %228 = vmatprep.subr.bf16.mxu0 %v368_v21 }
  0x50   :  { %229 = vmatpush1.bf16.msra.mxu0 %v370_v22 }
  0x51   :  { %230 = vmatprep.subr.bf16.mxu0 %v371_v23 }
  0x54   :  { %231 = vmatpush1.bf16.msra.mxu0 %v373_v24 }
  0x57   :  { %241 = vmatmul.mubr.bf16.vlgmr.msra.gmra.mrb[0].mxu0 %v374_v25 }
 0x12a   :  { %v242_v26 = vpop.f32.mrb[0].mxu0 }
 0x12b   :  { %v244_v27 = vpop.f32.mrb[1].mxu0 }
 0x12c   :  { %v331_v28 = vpack.c.bf16 %v244_v27, %v242_v26  ;;  %v246_v29 = vpop.f32.mrb[2].mxu0 }
 0x12d   :  { %v248_v30 = vpop.f32.mrb[3].mxu0 }
 0x12e   :  { %282 = vst [vmem:[#allocation8] sm:$0xff] %v331_v28  ;;  %v332_v31 = vpack.c.bf16 %v248_v30, %v246_v29 }
 0x130   :  { %283 = vst [vmem:[#allocation8 + $0x8] sm:$0xff] %v332_v31 }
 0x131   :  { %432 = shalt.err (!%p429_p6)
}
 0x132   :  { %s433_s10 = scalar_lea.hbm %s516_s2, 256 }
 0x133   :  { %p434_p7 = scmp.ne.s32.totalorder %s516_s2, %s433_s10  ;;  %p437_p8 = scmp.lt.u32.totalorder %s433_s10, %s516_s2 }
 0x135   :  { %p439_p9 = pnand %p437_p8, %p434_p7 }
 0x137   :  { %442 = shalt.err (!%p439_p9)
}
 0x138   :  { %295 = dma.vmem_to_hbm [thread:$0]  %s290_s6, 256, %s516_s2, [#allocation5], %s450_s19, %s450_s19, %s451_s20  }
 0x139   :  { %447 = dma.done.wait [#allocation5], 256  }
 0x13a   :  { %448 = vsyncadd [#allocation5], 4294967040 }
 0x13b   :  { %299 = vsyncpa [#allocation4], 1 }
 0x13c   :  { %300 = vsyncpa [#allocation7], 1 }
 0x13d   :  { %301 = vsyncpa [#allocation5], 1 }

</bundles_post_ra>
